<compile_context>
chip_gen: v7x
topology: tpu7x:2x2x1
jax: 0.10.0
libtpu: 0.0.40
codegen_flags: <defaults>
</compile_context>

<pallas_src>
import functools

import jax
import jax.numpy as jnp
from jax.experimental import pallas as pl
from jax.experimental.pallas import tpu as pltpu


_MAX_BLOCK_ELEMS = 1 << 20   # <= ~1 MiB as bool per output block (<=4 MiB if widened)
_MIN_STEP_ELEMS = 1 << 19    # fold batch rows until a step writes >= ~0.5 MiB
_TK_MAX = 2048


def _choose_tiles(B, T):
    """Pick (batch_block, query_tile, key_tile) for a (B,1,T,T) bool output."""
    # Key (lane) tile: multiple of 128, or the full dim if T is not.
    if T % 128 == 0 and T > _TK_MAX:
        tk = _TK_MAX
    else:
        tk = T
    # Query (sublane) tile: multiple of 32, or the full dim.
    if T * tk <= _MAX_BLOCK_ELEMS:
        tq = T
    else:
        tq = min(T, max(32, (_MAX_BLOCK_ELEMS // tk) // 32 * 32))
    # Small-T regime: fold several whole batch rows into one grid step.
    bb = 1
    if tq == T and tk == T and T * T < _MIN_STEP_ELEMS:
        want = max(1, _MIN_STEP_ELEMS // (T * T))
        for d in range(min(B, want), 0, -1):
            if B % d == 0:   # bb divides B -> no partial batch blocks
                bb = d
                break
    return bb, tq, tk


def _target_mask_kernel(pad_ix, tq, tk, tokens_ref, out_ref):
    # tokens_ref : (bb, 1, tk)     int32 -- token ids for this (batch, key) tile
    # out_ref    : (bb, 1, tq, tk) bool  -- one (query, key) tile of the mask
    q0 = pl.program_id(1) * tq
    k0 = pl.program_id(2) * tk

    pad = tokens_ref[...] != pad_ix          # (bb, 1, tk) bool, True where not padding
    pad4 = pad[:, :, None, :]                # (bb, 1, 1, tk)

    all_causal = (k0 + (tk - 1)) <= q0       # whole key tile <= first query row
    none_causal = k0 > (q0 + (tq - 1))       # whole key tile  > last query row

    @pl.when(all_causal)
    def _():
        # Fully below/on the diagonal: causal mask is all True -> pad mask only.
        out_ref[...] = jnp.broadcast_to(pad4, out_ref.shape)

    @pl.when(none_causal)
    def _():
        # Fully above the diagonal: constant False splat, no iota / compare.
        out_ref[...] = jnp.zeros(out_ref.shape, dtype=out_ref.dtype)

    @pl.when(jnp.logical_not(jnp.logical_or(all_causal, none_causal)))
    def _():
        # Diagonal block: the only place the int32 iota + compare runs.
        row = jax.lax.broadcasted_iota(jnp.int32, (tq, 1), 0) + q0
        col = jax.lax.broadcasted_iota(jnp.int32, (tq, tk), 1) + k0
        causal = (col <= row)[None, None, :, :]          # (1, 1, tq, tk)
        out_ref[...] = jnp.logical_and(causal, pad4)


def target_masker(tokens: jax.Array, pad_ix: int) -> jax.Array:
    """tokens: (B, T) int array -> (B, 1, T, T) bool combined causal+pad mask."""
    B, T = tokens.shape
    tokens3 = tokens.astype(jnp.int32).reshape(B, 1, T)

    bb, tq, tk = _choose_tiles(B, T)
    grid = (pl.cdiv(B, bb), pl.cdiv(T, tq), pl.cdiv(T, tk))

    kernel = functools.partial(_target_mask_kernel, pad_ix, tq, tk)

    return pl.pallas_call(
        kernel,
        out_shape=jax.ShapeDtypeStruct((B, 1, T, T), jnp.bool_),
        grid_spec=pltpu.PrefetchScalarGridSpec(
            num_scalar_prefetch=0,
            grid=grid,
            in_specs=[
                # one (batch-block, key-tile) chunk of token ids per grid step
                pl.BlockSpec((bb, 1, tk), lambda b, q, k: (b, 0, k)),
            ],
            out_specs=pl.BlockSpec((bb, 1, tq, tk), lambda b, q, k: (b, 0, q, k)),
        ),
        compiler_params=pltpu.CompilerParams(
            dimension_semantics=("parallel", "parallel", "parallel"),
        ),
    )(tokens3)


def _reference(tokens: jax.Array, pad_ix: int) -> jax.Array:
    B, T = tokens.shape
    pad_mask = (tokens != pad_ix)[:, None, None, :]                    # (B,1,1,T)
    causal = jnp.tril(jnp.ones((T, T), dtype=jnp.bool_))[None, None]   # (1,1,T,T)
    return jnp.logical_and(pad_mask, causal)


if __name__ == "__main__":
    PAD_IX = 0
    key = jax.random.PRNGKey(0)

    # Cases: spec-sized small case; T not a multiple of 128; batch-folded case;
    # and one T large enough to exercise key tiling, all three branch types,
    # and partial trailing query/key tiles.
    cases = [(2, 8), (2, 200), (3, 384), (1, 2176)]
    for i, (B, T) in enumerate(cases):
        k = jax.random.fold_in(key, i)
        tokens = jax.random.randint(k, (B, T), 0, 10, dtype=jnp.int32)
        tokens = tokens.at[:, max(T - 2, 0):].set(PAD_IX)   # force trailing padding

        mask = jax.block_until_ready(target_masker(tokens, PAD_IX))
        ref = _reference(tokens, PAD_IX)

        assert mask.shape == (B, 1, T, T), (mask.shape, (B, T))
        assert mask.dtype == jnp.bool_, mask.dtype
        assert bool(jnp.array_equal(mask, ref)), f"mismatch vs reference for B={B}, T={T}"

    print("KERNEL_OK")
</pallas_src>

<mosaic_0001>
module attributes {stable_mosaic.version = 11 : i64} {
  func.func @_target_mask_kernel(%arg0: i32, %arg1: i32, %arg2: i32, %arg3: memref<2x1x8xi32, #tpu.memory_space<vmem>>, %arg4: memref<2x1x8x8xi32, #tpu.memory_space<vmem>>) attributes {dimension_semantics = [#tpu.dimension_semantics<parallel>, #tpu.dimension_semantics<parallel>, #tpu.dimension_semantics<parallel>], iteration_bounds = array<i64: 1, 1, 1>, scalar_prefetch = 0 : i64, scratch_operands = 0 : i64, tpu.core_type = #tpu.core_type<tc>, window_params = [{transform_indices = @transform_0, window_bounds = array<i64: 2, 1, 8>}, {transform_indices = @transform_1, window_bounds = array<i64: 2, 1, 8, 8>}]} {
    %c8_i32 = arith.constant 8 : i32
    %0 = arith.muli %arg1, %c8_i32 : i32
    %c8_i32_0 = arith.constant 8 : i32
    %1 = arith.muli %arg2, %c8_i32_0 : i32
    %c0 = arith.constant 0 : index
    %c0_1 = arith.constant 0 : index
    %c0_2 = arith.constant 0 : index
    %2 = vector.load %arg3[%c0, %c0_1, %c0_2] : memref<2x1x8xi32, #tpu.memory_space<vmem>>, vector<2x1x8xi32>
    %c0_i32 = arith.constant 0 : i32
    %3 = vector.broadcast %c0_i32 : i32 to vector<2x1x8xi32>
    %4 = arith.cmpi ne, %2, %3 : vector<2x1x8xi32>
    %5 = vector.shape_cast %4 : vector<2x1x8xi1> to vector<2x1x1x8xi1>
    %c7_i32 = arith.constant 7 : i32
    %6 = arith.addi %1, %c7_i32 : i32
    %7 = arith.cmpi sle, %6, %0 : i32
    %c7_i32_3 = arith.constant 7 : i32
    %8 = arith.addi %0, %c7_i32_3 : i32
    %9 = arith.cmpi sgt, %1, %8 : i32
    %10 = arith.extui %7 : i1 to i32
    %c0_i32_4 = arith.constant 0 : i32
    %11 = arith.cmpi ne, %10, %c0_i32_4 : i32
    scf.if %11 {
      %18 = vector.shape_cast %5 : vector<2x1x1x8xi1> to vector<2x1x1x8xi1>
      %19 = vector.broadcast %18 : vector<2x1x1x8xi1> to vector<2x1x8x8xi1>
      %c0_7 = arith.constant 0 : index
      %c0_8 = arith.constant 0 : index
      %c0_9 = arith.constant 0 : index
      %c0_10 = arith.constant 0 : index
      %20 = vector.load %arg4[%c0_7, %c0_8, %c0_9, %c0_10] : memref<2x1x8x8xi32, #tpu.memory_space<vmem>>, vector<2x1x8x8xi32>
      %21 = arith.extui %19 : vector<2x1x8x8xi1> to vector<2x1x8x8xi32>
      %cst = arith.constant dense<0> : vector<2x1x8x8xi32>
      %22 = arith.cmpi ne, %20, %cst : vector<2x1x8x8xi32>
      tpu.vector_store %arg4[%c0_7, %c0_8, %c0_9, %c0_10], %21 {strides = array<i32>} : memref<2x1x8x8xi32, #tpu.memory_space<vmem>>, vector<2x1x8x8xi32>,
    } else {
    }
    %12 = arith.extui %9 : i1 to i32
    %c0_i32_5 = arith.constant 0 : i32
    %13 = arith.cmpi ne, %12, %c0_i32_5 : i32
    scf.if %13 {
      %false = arith.constant false
      %18 = vector.broadcast %false : i1 to vector<2x1x8x8xi1>
      %c0_7 = arith.constant 0 : index
      %c0_8 = arith.constant 0 : index
      %c0_9 = arith.constant 0 : index
      %c0_10 = arith.constant 0 : index
      %19 = vector.load %arg4[%c0_7, %c0_8, %c0_9, %c0_10] : memref<2x1x8x8xi32, #tpu.memory_space<vmem>>, vector<2x1x8x8xi32>
      %20 = arith.extui %18 : vector<2x1x8x8xi1> to vector<2x1x8x8xi32>
      %cst = arith.constant dense<0> : vector<2x1x8x8xi32>
      %21 = arith.cmpi ne, %19, %cst : vector<2x1x8x8xi32>
      tpu.vector_store %arg4[%c0_7, %c0_8, %c0_9, %c0_10], %20 {strides = array<i32>} : memref<2x1x8x8xi32, #tpu.memory_space<vmem>>, vector<2x1x8x8xi32>,
    } else {
    }
    %14 = arith.ori %7, %9 : i1
    %true = arith.constant true
    %15 = arith.xori %14, %true : i1
    %16 = arith.extui %15 : i1 to i32
    %c0_i32_6 = arith.constant 0 : i32
    %17 = arith.cmpi ne, %16, %c0_i32_6 : i32
    scf.if %17 {
      %18 = tpu.iota {dimensions = array<i32: 0>} : vector<8x1xi32>
      %19 = vector.broadcast %0 : i32 to vector<8x1xi32>
      %20 = arith.addi %18, %19 : vector<8x1xi32>
      %21 = tpu.iota {dimensions = array<i32: 1>} : vector<8x8xi32>
      %22 = vector.broadcast %1 : i32 to vector<8x8xi32>
      %23 = arith.addi %21, %22 : vector<8x8xi32>
      %24 = vector.broadcast %20 : vector<8x1xi32> to vector<8x8xi32>
      %25 = arith.cmpi sle, %23, %24 : vector<8x8xi32>
      %26 = vector.shape_cast %25 : vector<8x8xi1> to vector<1x1x8x8xi1>
      %27 = vector.broadcast %26 : vector<1x1x8x8xi1> to vector<2x1x8x8xi1>
      %28 = vector.broadcast %5 : vector<2x1x1x8xi1> to vector<2x1x8x8xi1>
      %29 = arith.andi %27, %28 : vector<2x1x8x8xi1>
      %c0_7 = arith.constant 0 : index
      %c0_8 = arith.constant 0 : index
      %c0_9 = arith.constant 0 : index
      %c0_10 = arith.constant 0 : index
      %30 = vector.load %arg4[%c0_7, %c0_8, %c0_9, %c0_10] : memref<2x1x8x8xi32, #tpu.memory_space<vmem>>, vector<2x1x8x8xi32>
      %31 = arith.extui %29 : vector<2x1x8x8xi1> to vector<2x1x8x8xi32>
      %cst = arith.constant dense<0> : vector<2x1x8x8xi32>
      %32 = arith.cmpi ne, %30, %cst : vector<2x1x8x8xi32>
      tpu.vector_store %arg4[%c0_7, %c0_8, %c0_9, %c0_10], %31 {strides = array<i32>} : memref<2x1x8x8xi32, #tpu.memory_space<vmem>>, vector<2x1x8x8xi32>,
    } else {
    }
    return
  }
  func.func @transform_0(%arg0: i32, %arg1: i32, %arg2: i32) -> (i32, i32, i32) {
    %c0_i32 = arith.constant 0 : i32
    %c0_i32_0 = arith.constant 0 : i32
    return %arg0, %c0_i32, %arg2 : i32, i32, i32
  }
  func.func @transform_1(%arg0: i32, %arg1: i32, %arg2: i32) -> (i32, i32, i32, i32) {
    %c0_i32 = arith.constant 0 : i32
    %c0_i32_0 = arith.constant 0 : i32
    return %arg0, %c0_i32, %arg1, %arg2 : i32, i32, i32, i32
  }
}

</mosaic_0001>

<bundles_post_ra>
// kernel: tpu_custom_call.1
= control target key start
LH: loop header
LB: loop body
LE: loop exit
PB: predicated region body
PF: predicated region fallthrough
CT: control target
= control target key end

     0   :  { %6 = vsyncpa [#allocation3], 0  ;;  %s125_s6 = smov [#allocation2]   ;;  %s157_s0 = inlined_call_operand.hbm [shape: s32[2,1,8], index: 0, kind: input, shape index: {}]   ;;  %s158_s1 = inlined_call_operand.vmem [shape: s32[2,1,8,8], index: 1, kind: output, shape index: {}]  }
   0x1   :  { %s12_s7 = sshll.u32 %s125_s6, 4  ;;  %s101_s10 = scalar_lea.hbm %s157_s0, 32  ;;  %s13_s7 = int_to_ptr.vmem [resolvable:$true] %s12_s7 }
   0x2   :  { %p102_p0 = scmp.ne.s32.totalorder %s157_s0, %s101_s10  ;;  %p105_p1 = scmp.lt.u32.totalorder %s101_s10, %s157_s0 }
   0x4   :  { %p107_p2 = pnand %p105_p1, %p102_p0 }
   0x6   :  { %110 = shalt.err (!%p107_p2)
}
   0x7   :  { %s111_s15 = scalar_lea.vmem %s13_s7, 32  ;;  %p116_p4 = scmp.lt.s32.totalorder %s13_s7, %s13_s7 }
   0x8   :  { %p112_p3 = scmp.ne.s32.totalorder %s13_s7, %s111_s15  ;;  %p117_p5 = scmp.lt.s32.totalorder %s111_s15, %s111_s15 }
   0xa   :  { %p118_p6 = por %p117_p5, %p116_p4 }
   0xc   :  { %p119_p7 = pnand %p118_p6, %p112_p3 }
   0xe   :  { %122 = shalt.err (!%p119_p7)
}
   0xf   :  { %s126_s16 = smov 16   ;;  %s127_s17 = smov 1  }
  0x10   :  { %18 = dma.hbm_to_vmem [thread:$0]  %s157_s0, 32, %s13_s7, [#allocation3], %s126_s16, %s126_s16, %s127_s17  }
  0x11   :  { %123 = dma.done.wait [#allocation3], 32  }
  0x12   :  { %124 = vsyncadd [#allocation3], 4294967264  ;;  %v62_v0 = vlaneseq  ;;  %v24_v4 = vld [vmem:[#allocation2] sm:$0x1]  ;;  %v25_v5 = vld [vmem:[#allocation2 + $0x1] sm:$0x1] }
  0x13   :  { %vm26_vm0 = vcmp.ne.s32.totalorder %v24_v4, 0  ;;  %vm27_vm1 = vcmp.ne.s32.totalorder %v25_v5, 0  ;;  %v128_v6 = vmov 0   ;;  %vm89_vm4 = vcmask 64512  }
  0x14   :  { %v63_v1 = vshrl.u32 %v62_v0, 7  ;;  %v67_v2 = vand.u32 127, %v62_v0  ;;  %v73_v7 = vsel %vm26_vm0, 1, %v128_v6  ;;  %v74_v8 = vsel %vm27_vm1, 1, %v128_v6 }
  0x16   :  { %v77_v3 = vsub.s32 0, %v63_v1  ;;  %vm70_vm2 = vcmp.le.s32.totalorder %v67_v2, %v63_v1 }
  0x18   :  { %v78_v9 = vrot.slane %v73_v7, %v77_v3  ;;  %v82_v10 = vrot.slane %v74_v8, %v77_v3 }
  0x1a   :  { %vm83_vm3 = vcmp.eq.s32.totalorder %v78_v9, 1  ;;  %vm84_vm5 = vcmp.eq.s32.totalorder %v82_v10, 1 }
  0x1b   :  { %vm85_vm6 = vmand %vm70_vm2, %vm83_vm3 }
  0x1c   :  { %v87_v11 = vsel %vm85_vm6, 1, %v128_v6  ;;  %vm86_vm7 = vmand %vm70_vm2, %vm84_vm5 }
  0x1d   :  { %90 = vst.msk [vmem:[%s158_s1] sm:$0xff] %vm89_vm4, %v87_v11  ;;  %v88_v12 = vsel %vm86_vm7, 1, %v128_v6 }
  0x1e   :  { %91 = vst.msk [vmem:[%s158_s1 + $0x8] sm:$0xff] %vm89_vm4, %v88_v12 }
  0x1f   :  { %96 = vsyncpa [#allocation3], 1 }

</bundles_post_ra>
